<compile_context>
chip_gen: v7x
topology: tpu7x:2x2x1
jax: 0.10.0
libtpu: 0.0.40
codegen_flags: <defaults>
</compile_context>

<pallas_src>
import functools

import jax
import jax.numpy as jnp
from jax.experimental import pallas as pl
from jax.experimental.pallas import tpu as pltpu


def _round_up(n, m):
    return ((n + m - 1) // m) * m


def _choose_batch_tiling(B):
    """Pick (tile_b, B_pad): tile_b multiple of 16, bounded round-up waste,
    and >= 2 grid steps whenever B >= 32 (so v7x megacore can split)."""
    if B <= 16:
        return 16, 16
    max_waste = max(int(0.125 * B), 15)
    need_two_steps = B >= 32
    for t in (1024, 512, 256, 128, 64, 32, 16):
        b_pad = _round_up(B, t)
        if b_pad - B > max_waste:
            continue
        if need_two_steps and b_pad // t < 2:
            continue
        return t, b_pad
    return 16, _round_up(B, 16)


def classifier_kernel(x_ref, w1_ref, b1_ref, w2_ref, b2_ref, w3_ref, b3_ref,
                      o_ref, *, out_size):
    # Cast x to bf16 in-kernel (input stays f32 in HBM; no wrapper staging).
    x = x_ref[...].astype(jnp.bfloat16)

    # fc1 + relu  (bf16 operands -> MXU, f32 accumulation, f32 elementwise)
    h1 = jnp.dot(x, w1_ref[...], preferred_element_type=jnp.float32)
    h1 = jnp.maximum(h1 + b1_ref[...], 0.0)

    # (dropout -> identity in eval mode)

    # fc2 + relu
    h2 = jnp.dot(h1.astype(jnp.bfloat16), w2_ref[...],
                 preferred_element_type=jnp.float32)
    h2 = jnp.maximum(h2 + b2_ref[...], 0.0)

    # fc3 (class dim padded to 128 internally; padded columns carry -1e30 bias)
    logits = jnp.dot(h2.astype(jnp.bfloat16), w3_ref[...],
                     preferred_element_type=jnp.float32) + b3_ref[...]

    # numerically-stable log_softmax along the class axis (dim=1), f32 math.
    m = jnp.max(logits, axis=-1, keepdims=True)
    shifted = logits - m
    lse = jnp.log(jnp.sum(jnp.exp(shifted), axis=-1, keepdims=True))
    logp = shifted - lse

    # Store only the real classes (masked 102-lane store is near-parity).
    o_ref[...] = logp[:, :out_size].astype(o_ref.dtype)


def classifier_forward(x, w1, b1, w2, b2, w3, b3, *, tile_b=None,
                       out_dtype=jnp.bfloat16):
    """x: (B, in) f32.  Weights (in, out) / biases (1, out) f32 (PyTorch layout^T)."""
    B, in_size = x.shape
    h1_size = w1.shape[1]
    h2_size = w2.shape[1]
    out_size = w3.shape[1]

    # Internal lane-dense padded class dimension (multiple of 128) for fc3.
    out_pad = pl.cdiv(out_size, 128) * 128

    if tile_b is None:
        tile_b, B_pad = _choose_batch_tiling(B)
    else:
        B_pad = _round_up(B, tile_b)

    # ---- wrapper-side staging (weights only; x stays native f32) ----
    if B_pad != B:
        xp = jnp.zeros((B_pad, in_size), x.dtype).at[:B].set(x)
    else:
        xp = x
    w1b = w1.astype(jnp.bfloat16)
    w2b = w2.astype(jnp.bfloat16)
    w3p = jnp.zeros((h2_size, out_pad), jnp.bfloat16).at[:, :out_size].set(
        w3.astype(jnp.bfloat16))
    b1f = b1.astype(jnp.float32)
    b2f = b2.astype(jnp.float32)
    # Padded classes get a huge negative bias -> exp() underflows to exactly 0.
    b3p = jnp.full((1, out_pad), -1e30, jnp.float32).at[:, :out_size].set(
        b3.astype(jnp.float32))

    grid = (B_pad // tile_b,)

    # Resident (non-tiled) specs for weights/biases: same block every step.
    def resident(shape):
        return pl.BlockSpec(shape, lambda i: (0, 0))

    flops = 2 * B_pad * (in_size * h1_size + h1_size * h2_size + h2_size * out_pad)
    transcendentals = B_pad * (out_pad + 1)          # exp per logit + log per row
    out_bytes_per_el = jnp.dtype(out_dtype).itemsize
    bytes_accessed = (
        4 * B_pad * in_size                                                  # f32 x
        + 2 * (in_size * h1_size + h1_size * h2_size + h2_size * out_pad)    # bf16 W
        + 4 * (h1_size + h2_size + out_pad)                                  # f32 b
        + out_bytes_per_el * B_pad * out_size                                # output
    )

    out = pl.pallas_call(
        functools.partial(classifier_kernel, out_size=out_size),
        out_shape=jax.ShapeDtypeStruct((B_pad, out_size), out_dtype),
        grid=grid,
        in_specs=[
            pl.BlockSpec((tile_b, in_size), lambda i: (i, 0)),   # x: batch-tiled
            resident((in_size, h1_size)),                        # W1
            resident((1, h1_size)),                              # b1
            resident((h1_size, h2_size)),                        # W2
            resident((1, h2_size)),                              # b2
            resident((h2_size, out_pad)),                        # W3 (padded cols)
            resident((1, out_pad)),                              # b3 (padded cols)
        ],
        out_specs=pl.BlockSpec((tile_b, out_size), lambda i: (i, 0)),
        compiler_params=pltpu.CompilerParams(
            dimension_semantics=("parallel",)),
        cost_estimate=pl.CostEstimate(
            flops=flops,
            transcendentals=transcendentals,
            bytes_accessed=bytes_accessed),
    )(xp, w1b, b1f, w2b, b2f, w3p, b3p)

    # Row slice only if batch padding was actually needed (guarded, cheap).
    return out if B_pad == B else out[:B]


def init_linear(key, fan_in, fan_out):
    # PyTorch nn.Linear default init: U(-1/sqrt(fan_in), 1/sqrt(fan_in))
    kw, kb = jax.random.split(key)
    bound = 1.0 / jnp.sqrt(float(fan_in))
    w = jax.random.uniform(kw, (fan_in, fan_out), jnp.float32, -bound, bound)
    b = jax.random.uniform(kb, (1, fan_out), jnp.float32, -bound, bound)
    return w, b


if __name__ == "__main__":
    # Small, deterministic config consistent with the module's __init__.
    batch = 4
    input_size = 32
    hidden1 = 64
    hidden2 = 48
    output_size = 102

    key = jax.random.PRNGKey(0)
    kx, k1, k2, k3 = jax.random.split(key, 4)

    x = jax.random.normal(kx, (batch, input_size), jnp.float32)
    w1, b1 = init_linear(k1, input_size, hidden1)
    w2, b2 = init_linear(k2, hidden1, hidden2)
    w3, b3 = init_linear(k3, hidden2, output_size)

    out = classifier_forward(x, w1, b1, w2, b2, w3, b3)
    out = jax.block_until_ready(out)

    # Reference: same bf16-fed MXU / f32-accumulate path, f32 log_softmax.
    xb = x.astype(jnp.bfloat16)
    h1r = jnp.maximum(
        jnp.dot(xb, w1.astype(jnp.bfloat16),
                preferred_element_type=jnp.float32) + b1, 0.0)
    h2r = jnp.maximum(
        jnp.dot(h1r.astype(jnp.bfloat16), w2.astype(jnp.bfloat16),
                preferred_element_type=jnp.float32) + b2, 0.0)
    logits = jnp.dot(h2r.astype(jnp.bfloat16), w3.astype(jnp.bfloat16),
                     preferred_element_type=jnp.float32) + b3
    ref = jax.nn.log_softmax(logits, axis=1)

    assert out.shape == (batch, output_size)
    assert out.dtype == jnp.bfloat16
    # Tolerance covers the final bf16 output quantization (~0.4% relative).
    assert jnp.allclose(out.astype(jnp.float32), ref, atol=5e-2, rtol=2e-2), \
        "mismatch vs reference"

    print("KERNEL_OK")
</pallas_src>

<mosaic_0001>
module attributes {stable_mosaic.version = 11 : i64} {
  func.func @classifier_kernel(%arg0: i32, %arg1: memref<16x32xf32, #tpu.memory_space<vmem>>, %arg2: memref<32x64xbf16, #tpu.memory_space<vmem>>, %arg3: memref<1x64xf32, #tpu.memory_space<vmem>>, %arg4: memref<64x48xbf16, #tpu.memory_space<vmem>>, %arg5: memref<1x48xf32, #tpu.memory_space<vmem>>, %arg6: memref<48x128xbf16, #tpu.memory_space<vmem>>, %arg7: memref<1x128xf32, #tpu.memory_space<vmem>>, %arg8: memref<16x102xbf16, #tpu.memory_space<vmem>>) attributes {dimension_semantics = [#tpu.dimension_semantics<parallel>], iteration_bounds = array<i64: 1>, scalar_prefetch = 0 : i64, scratch_operands = 0 : i64, tpu.core_type = #tpu.core_type<tc>, window_params = [{transform_indices = @transform_0, window_bounds = array<i64: 16, 32>}, {pipeline_mode = #tpu.pipeline_mode<synchronous>, transform_indices = @transform_1, window_bounds = array<i64: 32, 64>}, {pipeline_mode = #tpu.pipeline_mode<synchronous>, transform_indices = @transform_2, window_bounds = array<i64: 1, 64>}, {pipeline_mode = #tpu.pipeline_mode<synchronous>, transform_indices = @transform_3, window_bounds = array<i64: 64, 48>}, {pipeline_mode = #tpu.pipeline_mode<synchronous>, transform_indices = @transform_4, window_bounds = array<i64: 1, 48>}, {pipeline_mode = #tpu.pipeline_mode<synchronous>, transform_indices = @transform_5, window_bounds = array<i64: 48, 128>}, {pipeline_mode = #tpu.pipeline_mode<synchronous>, transform_indices = @transform_6, window_bounds = array<i64: 1, 128>}, {transform_indices = @transform_7, window_bounds = array<i64: 16, 102>}]} {
    %c0 = arith.constant 0 : index
    %c0_0 = arith.constant 0 : index
    %0 = vector.load %arg1[%c0, %c0_0] : memref<16x32xf32, #tpu.memory_space<vmem>>, vector<16x32xf32>
    %1 = arith.truncf %0 : vector<16x32xf32> to vector<16x32xbf16>
    %c0_1 = arith.constant 0 : index
    %c0_2 = arith.constant 0 : index
    %2 = vector.load %arg2[%c0_1, %c0_2] : memref<32x64xbf16, #tpu.memory_space<vmem>>, vector<32x64xbf16>
    %cst = arith.constant dense<0.000000e+00> : vector<16x64xf32>
    %3 = tpu.matmul %1, %2, %cst {dimension_numbers = #tpu.dot_dimension_numbers<[1], [0], [0], [1], [0, 0, 1, 1], [], []>} : vector<16x32xbf16>, vector<32x64xbf16>, vector<16x64xf32> -> vector<16x64xf32>
    %c0_3 = arith.constant 0 : index
    %c0_4 = arith.constant 0 : index
    %4 = vector.load %arg3[%c0_3, %c0_4] : memref<1x64xf32, #tpu.memory_space<vmem>>, vector<1x64xf32>
    %5 = vector.broadcast %4 : vector<1x64xf32> to vector<16x64xf32>
    %6 = arith.addf %3, %5 : vector<16x64xf32>
    %cst_5 = arith.constant 0.000000e+00 : f32
    %7 = vector.broadcast %cst_5 : f32 to vector<16x64xf32>
    %8 = arith.maximumf %6, %7 : vector<16x64xf32>
    %9 = arith.truncf %8 : vector<16x64xf32> to vector<16x64xbf16>
    %c0_6 = arith.constant 0 : index
    %c0_7 = arith.constant 0 : index
    %10 = vector.load %arg4[%c0_6, %c0_7] : memref<64x48xbf16, #tpu.memory_space<vmem>>, vector<64x48xbf16>
    %cst_8 = arith.constant dense<0.000000e+00> : vector<16x48xf32>
    %11 = tpu.matmul %9, %10, %cst_8 {dimension_numbers = #tpu.dot_dimension_numbers<[1], [0], [0], [1], [0, 0, 1, 1], [], []>} : vector<16x64xbf16>, vector<64x48xbf16>, vector<16x48xf32> -> vector<16x48xf32>
    %c0_9 = arith.constant 0 : index
    %c0_10 = arith.constant 0 : index
    %12 = vector.load %arg5[%c0_9, %c0_10] : memref<1x48xf32, #tpu.memory_space<vmem>>, vector<1x48xf32>
    %13 = vector.broadcast %12 : vector<1x48xf32> to vector<16x48xf32>
    %14 = arith.addf %11, %13 : vector<16x48xf32>
    %cst_11 = arith.constant 0.000000e+00 : f32
    %15 = vector.broadcast %cst_11 : f32 to vector<16x48xf32>
    %16 = arith.maximumf %14, %15 : vector<16x48xf32>
    %17 = arith.truncf %16 : vector<16x48xf32> to vector<16x48xbf16>
    %c0_12 = arith.constant 0 : index
    %c0_13 = arith.constant 0 : index
    %18 = vector.load %arg6[%c0_12, %c0_13] : memref<48x128xbf16, #tpu.memory_space<vmem>>, vector<48x128xbf16>
    %cst_14 = arith.constant dense<0.000000e+00> : vector<16x128xf32>
    %19 = tpu.matmul %17, %18, %cst_14 {dimension_numbers = #tpu.dot_dimension_numbers<[1], [0], [0], [1], [0, 0, 1, 1], [], []>} : vector<16x48xbf16>, vector<48x128xbf16>, vector<16x128xf32> -> vector<16x128xf32>
    %c0_15 = arith.constant 0 : index
    %c0_16 = arith.constant 0 : index
    %20 = vector.load %arg7[%c0_15, %c0_16] : memref<1x128xf32, #tpu.memory_space<vmem>>, vector<1x128xf32>
    %21 = vector.broadcast %20 : vector<1x128xf32> to vector<16x128xf32>
    %22 = arith.addf %19, %21 : vector<16x128xf32>
    %cst_17 = arith.constant dense<0xFF800000> : vector<16xf32>
    %23 = vector.multi_reduction <maximumf>, %22, %cst_17 [1] : vector<16x128xf32> to vector<16xf32>
    %24 = vector.shape_cast %23 : vector<16xf32> to vector<16x1xf32>
    %25 = vector.broadcast %24 : vector<16x1xf32> to vector<16x128xf32>
    %26 = arith.subf %22, %25 : vector<16x128xf32>
    %27 = math.exp %26 : vector<16x128xf32>
    %cst_18 = arith.constant dense<0.000000e+00> : vector<16xf32>
    %28 = vector.multi_reduction <add>, %27, %cst_18 [1] : vector<16x128xf32> to vector<16xf32>
    %29 = vector.shape_cast %28 : vector<16xf32> to vector<16x1xf32>
    %30 = math.log %29 : vector<16x1xf32>
    %31 = vector.broadcast %30 : vector<16x1xf32> to vector<16x128xf32>
    %32 = arith.subf %26, %31 : vector<16x128xf32>
    %33 = vector.extract_strided_slice %32 {offsets = [0, 0], sizes = [16, 102], strides = [1, 1]} : vector<16x128xf32> to vector<16x102xf32>
    %34 = arith.truncf %33 : vector<16x102xf32> to vector<16x102xbf16>
    %c0_19 = arith.constant 0 : index
    %c0_20 = arith.constant 0 : index
    %35 = vector.load %arg8[%c0_19, %c0_20] : memref<16x102xbf16, #tpu.memory_space<vmem>>, vector<16x102xbf16>
    tpu.vector_store %arg8[%c0_19, %c0_20], %34 {strides = array<i32>} : memref<16x102xbf16, #tpu.memory_space<vmem>>, vector<16x102xbf16>,
    return
  }
  func.func @transform_0(%arg0: i32) -> (i32, i32) {
    %c0_i32 = arith.constant 0 : i32
    %c0_i32_0 = arith.constant 0 : i32
    return %arg0, %c0_i32 : i32, i32
  }
  func.func @transform_1(%arg0: i32) -> (i32, i32) {
    %c0_i32 = arith.constant 0 : i32
    %c0_i32_0 = arith.constant 0 : i32
    %c0_i32_1 = arith.constant 0 : i32
    return %c0_i32, %c0_i32_0 : i32, i32
  }
  func.func @transform_2(%arg0: i32) -> (i32, i32) {
    %c0_i32 = arith.constant 0 : i32
    %c0_i32_0 = arith.constant 0 : i32
    %c0_i32_1 = arith.constant 0 : i32
    return %c0_i32, %c0_i32_0 : i32, i32
  }
  func.func @transform_3(%arg0: i32) -> (i32, i32) {
    %c0_i32 = arith.constant 0 : i32
    %c0_i32_0 = arith.constant 0 : i32
    %c0_i32_1 = arith.constant 0 : i32
    return %c0_i32, %c0_i32_0 : i32, i32
  }
  func.func @transform_4(%arg0: i32) -> (i32, i32) {
    %c0_i32 = arith.constant 0 : i32
    %c0_i32_0 = arith.constant 0 : i32
    %c0_i32_1 = arith.constant 0 : i32
    return %c0_i32, %c0_i32_0 : i32, i32
  }
  func.func @transform_5(%arg0: i32) -> (i32, i32) {
    %c0_i32 = arith.constant 0 : i32
    %c0_i32_0 = arith.constant 0 : i32
    %c0_i32_1 = arith.constant 0 : i32
    return %c0_i32, %c0_i32_0 : i32, i32
  }
  func.func @transform_6(%arg0: i32) -> (i32, i32) {
    %c0_i32 = arith.constant 0 : i32
    %c0_i32_0 = arith.constant 0 : i32
    %c0_i32_1 = arith.constant 0 : i32
    return %c0_i32, %c0_i32_0 : i32, i32
  }
  func.func @transform_7(%arg0: i32) -> (i32, i32) {
    %c0_i32 = arith.constant 0 : i32
    %c0_i32_0 = arith.constant 0 : i32
    return %arg0, %c0_i32 : i32, i32
  }
}

</mosaic_0001>

<bundles_post_ra>
// kernel: tpu_custom_call.1
= control target key start
LH: loop header
LB: loop body
LE: loop exit
PB: predicated region body
PF: predicated region fallthrough
CT: control target
= control target key end

     0   :  { %v419_v1 = vmov 0.0   ;;  %vm420_vm0 = vmmov 0   ;;  %vm54_vm1 = vcmask 261120   ;;  %s521_s0 = inlined_call_operand.vmem [shape: f32[16,32], index: 0, kind: input, shape index: {}]   ;;  %s522_s1 = inlined_call_operand.vmem [shape: bf16[32,64], index: 1, kind: input, shape index: {}]   ;;  %s523_s2 = inlined_call_operand.vmem [shape: f32[1,64], index: 2, kind: input, shape index: {}]   ;;  %s524_s3 = inlined_call_operand.vmem [shape: bf16[64,48], index: 3, kind: input, shape index: {}]   ;;  %s525_s4 = inlined_call_operand.vmem [shape: f32[1,48], index: 4, kind: input, shape index: {}]   ;;  %s526_s5 = inlined_call_operand.vmem [shape: bf16[48,128], index: 5, kind: input, shape index: {}]   ;;  %s527_s6 = inlined_call_operand.vmem [shape: f32[1,128], index: 6, kind: input, shape index: {}]   ;;  %s528_s7 = inlined_call_operand.hbm [shape: bf16[16,102], index: 7, kind: output, shape index: {}]  }
   0x1   :  { %v378_v0 = vld [vmem:[%s522_s1] sm:$0xff]   ;;  %343 = vmatprep.subr.bf16.mxu0 %v419_v1  ;;  %v379_v2 = vld [vmem:[%s522_s1 + $0x8] sm:$0xff]   ;;  %351 = vmatprep.subr.bf16.mxu1 %v419_v1 }
   0x2   :  { %344 = vmatpush3.bf16.msra.mxu0 %v378_v0  ;;  %347 = vmatprep.mubr.msk.bf16.mxu0 %vm420_vm0, %v419_v1  ;;  %v28_v3 = vld [vmem:[%s521_s0] sm:$0xff]  ;;  %v29_v4 = vld [vmem:[%s521_s0 + $0x8] sm:$0xff] }
   0x3   :  { %345 = vmatprep.subr.bf16.mxu0 %v419_v1  ;;  %v380_v5 = vld [vmem:[%s524_s3] sm:$0xff]   ;;  %359 = vmatprep.mubr.msk.bf16.mxu1 %vm420_vm0, %v419_v1  ;;  %v381_v6 = vld [vmem:[%s524_s3 + $0x8] sm:$0xff]   ;;  %v30_v7 = vpack.c.bf16 %v29_v4, %v28_v3 }
   0x4   :  { %352 = vmatpush3.bf16.msra.mxu1 %v380_v5 }
   0x5   :  { %353 = vmatprep.subr.bf16.mxu1 %v419_v1 }
   0x6   :  { %346 = vmatpush3.bf16.msra.mxu0 %v379_v2 }
   0x7   :  { %363 = vmatprep.subr.bf16.mxu0 %v419_v1 }
   0x8   :  { %12 = vsyncpa [#allocation3], 0  ;;  %354 = vmatpush3.bf16.msra.mxu1 %v381_v6  ;;  %v382_v8 = vld [vmem:[%s524_s3 + $0x10] sm:$0xff]   ;;  %v383_v9 = vld [vmem:[%s524_s3 + $0x18] sm:$0xff]   ;;  %vm141_vm2 = vcmask 523264   ;;  %vm220_vm3 = vcmask 392192  }
   0x9   :  { %348 = vmatmul.mubr.msk.bf16.vlgmr.msra.gmra.mrb[0].mxu0 %vm54_vm1, %v30_v7  ;;  %355 = vmatprep.subr.bf16.mxu1 %v419_v1  ;;  %v384_v10 = vld [vmem:[%s526_s5] sm:$0xff]   ;;  %v385_v21 = vld [vmem:[%s526_s5 + $0x8] sm:$0xff]   ;;  %v386_v22 = vld [vmem:[%s526_s5 + $0x10] sm:$0xff]   ;;  %vm293_vm4 = vcmask 830464  }
   0xa   :  { %369 = vmatprep.mubr.msk.bf16.mxu0 %vm420_vm0, %v419_v1  ;;  %364 = vmatpush3.bf16.msra.mxu0 %v384_v10  ;;  %v312_v11 = vld [vmem:[%s523_s2] ss:$0 sm:$0xff] }
   0xb   :  { %365 = vmatprep.subr.bf16.mxu0 %v419_v1  ;;  %v316_v23 = vld [vmem:[%s525_s4] ss:$0 sm:$0xff]  ;;  %s421_s4 = smov [#allocation2]  }
   0xc   :  { %356 = vmatpush3.bf16.msra.mxu1 %v382_v8  ;;  %v322_v33 = vld [vmem:[%s527_s6] ss:$0 sm:$0xff]  ;;  %s301_s5 = sshll.u32 %s421_s4, 4  ;;  %s302_s5 = int_to_ptr.vmem [resolvable:$true] %s301_s5 }
   0xd   :  { %357 = vmatprep.subr.bf16.mxu1 %v419_v1  ;;  %s395_s6 = scalar_lea.vmem %s302_s5, 128  ;;  %p400_p1 = scmp.lt.s32.totalorder %s302_s5, %s302_s5 }
   0xe   :  { %366 = vmatpush3.bf16.msra.mxu0 %v385_v21  ;;  %p396_p0 = scmp.ne.s32.totalorder %s302_s5, %s395_s6  ;;  %p401_p2 = scmp.lt.s32.totalorder %s395_s6, %s395_s6 }
   0xf   :  { %367 = vmatprep.subr.bf16.mxu0 %v419_v1 }
  0x10   :  { %358 = vmatpush3.bf16.msra.mxu1 %v383_v9  ;;  %p402_p3 = por %p401_p2, %p400_p1 }
  0x12   :  { %368 = vmatpush3.bf16.msra.mxu0 %v386_v22  ;;  %p403_p4 = pnand %p402_p3, %p396_p0 }
  0xdc   :  { %v92_v12 = vpop.f32.mrb[0].mxu0 }
  0xdd   :  { %v93_v13 = vadd.f32 %v312_v11, %v92_v12  ;;  %v349_v14 = vpop.f32.mrb[1].mxu0 }
  0xde   :  { %v95_v15 = vpop.f32.mrb[2].mxu0 }
  0xdf   :  { %v96_v16 = vadd.f32 %v312_v11, %v95_v15  ;;  %v350_v17 = vpop.f32.mrb[3].mxu0  ;;  %v99_v18 = vmax.f32 %v93_v13, 0.0 }
  0xe1   :  { %v100_v19 = vmax.f32 %v96_v16, 0.0 }
  0xe3   :  { %v101_v20 = vpack.c.bf16 %v100_v19, %v99_v18 }
  0xe5   :  { %360 = vmatmul.mubr.msk.bf16.vlgmr.msra.gmra.mrb[0].mxu1 %vm141_vm2, %v101_v20 }
 0x1b8   :  { %v179_v24 = vpop.f32.mrb[0].mxu1 }
 0x1b9   :  { %v180_v25 = vadd.f32 %v316_v23, %v179_v24  ;;  %v361_v26 = vpop.f32.mrb[1].mxu1 }
 0x1ba   :  { %v182_v27 = vpop.f32.mrb[2].mxu1 }
 0x1bb   :  { %v183_v28 = vadd.f32 %v316_v23, %v182_v27  ;;  %v362_v29 = vpop.f32.mrb[3].mxu1  ;;  %v186_v30 = vmax.f32 %v180_v25, 0.0 }
 0x1bd   :  { %v187_v31 = vmax.f32 %v183_v28, 0.0 }
 0x1bf   :  { %v188_v32 = vpack.c.bf16 %v187_v31, %v186_v30 }
 0x1c1   :  { %370 = vmatmul.mubr.msk.bf16.vlgmr.msra.gmra.mrb[4].mxu0 %vm220_vm3, %v188_v32 }
 0x294   :  { %v258_v34 = vpop.f32.mrb[4].mxu0 }
 0x295   :  { %v259_v35 = vadd.f32 %v322_v33, %v258_v34  ;;  %v371_v36 = vpop.f32.mrb[5].mxu0 }
 0x296   :  { %v261_v37 = vpop.f32.mrb[6].mxu0 }
 0x297   :  { %265 = vmax.xlane.f32.xlu0 %v259_v35  ;;  %v372_v38 = vpop.f32.mrb[7].mxu0  ;;  %v262_v39 = vadd.f32 %v322_v33, %v261_v37 }
 0x29b   :  { %267 = vmax.xlane.f32.xlu0 %v262_v39 }
 0x324   :  { %v266_v40 = vpop.xlane.xlu0 %265 }
 0x325   :  { %v269_v41 = vsub.f32 %v259_v35, %v266_v40 }
 0x327   :  { %v271_v42 = vmul.f32 1.442695, %v269_v41 }
 0x328   :  { %v268_v43 = vpop.xlane.xlu0 %267 }
 0x329   :  { %v270_v44 = vsub.f32 %v262_v39, %v268_v43  ;;  %387 = vpow2.f32 %v271_v42 }
 0x32b   :  { %v273_v45 = vmul.f32 1.442695, %v270_v44 }
 0x32d   :  { %389 = vpow2.f32 %v273_v45 }
 0x333   :  { %v388_v46 = vpop.eup %387 }
 0x334   :  { %275 = vadd.xlane.f32.xlu1 %v388_v46 }
 0x337   :  { %v390_v47 = vpop.eup %389 }
 0x338   :  { %277 = vadd.xlane.f32.xlu1 %v390_v47 }
 0x3c1   :  { %v276_v48 = vpop.xlane.xlu1 %275 }
 0x3c2   :  { %391 = vlog2.f32 %v276_v48 }
 0x3c5   :  { %v278_v49 = vpop.xlane.xlu1 %277 }
 0x3c6   :  { %393 = vlog2.f32 %v278_v49 }
 0x3cc   :  { %v392_v50 = vpop.eup %391 }
 0x3cd   :  { %v280_v51 = vmul.f32 0.6931472, %v392_v50 }
 0x3cf   :  { %v283_v52 = vsub.f32 %v269_v41, %v280_v51 }
 0x3d0   :  { %v394_v53 = vpop.eup %393 }
 0x3d1   :  { %v329_v54 = vpack.c.bf16 %v283_v52, %v283_v52  ;;  %v282_v55 = vmul.f32 0.6931472, %v394_v53 }
 0x3d3   :  { %294 = vst.msk [vmem:[#allocation2] sm:$0xf] %vm293_vm4, %v329_v54  ;;  %v284_v56 = vsub.f32 %v270_v44, %v282_v55 }
 0x3d5   :  { %v330_v57 = vpack.c.bf16 %v284_v56, %v284_v56 }
 0x3d7   :  { %295 = vst.msk [vmem:[#allocation2 + $0x4] sm:$0xf] %vm293_vm4, %v330_v57 }
 0x3d8   :  { %406 = shalt.err (!%p403_p4)
}
 0x3d9   :  { %s407_s27 = scalar_lea.hbm %s528_s7, 128 }
 0x3da   :  { %p408_p5 = scmp.ne.s32.totalorder %s528_s7, %s407_s27  ;;  %p411_p6 = scmp.lt.u32.totalorder %s407_s27, %s528_s7 }
 0x3dc   :  { %p413_p7 = pnand %p411_p6, %p408_p5 }
 0x3de   :  { %416 = shalt.err (!%p413_p7)
}
 0x3df   :  { %s422_s9 = smov 64   ;;  %s423_s10 = smov 4  }
 0x3e0   :  { %307 = dma.vmem_to_hbm [thread:$0]  %s302_s5, 128, %s528_s7, [#allocation3], %s422_s9, %s422_s9, %s423_s10  }
 0x3e1   :  { %417 = dma.done.wait [#allocation3], 128  }
 0x3e2   :  { %418 = vsyncadd [#allocation3], 4294967168 }
 0x3e3   :  { %311 = vsyncpa [#allocation3], 1 }

</bundles_post_ra>
